<compile_context>
chip_gen: v7x
topology: tpu7x:2x2x1
jax: 0.10.0
libtpu: 0.0.40
codegen_flags: <defaults>
</compile_context>

<pallas_src>
import numpy as np

import jax
import jax.numpy as jnp
from jax.experimental import pallas as pl
from jax.experimental.pallas import tpu as pltpu

NUM_ORIG_CHANNELS = 5            # channels 0..4 pass through untouched
N_NEW_CHANNELS = 4               # channels 5..8 are overwritten with CT
TOTAL_CHANNELS = NUM_ORIG_CHANNELS + N_NEW_CHANNELS   # 9
N_IN_CHANNELS = 4                # only bands x0..x3 are ever read


def _agct_kernel(alpha_ref, img_ref, out_ref, ct_buf, sem):
    # alpha_ref: (4, 10) float32 in SMEM (static scalar reads).
    # img_ref:   (4, tile_h, W) in VMEM -- bands 0..3 of batch n, one row tile.
    # out_ref:   (N, 9, H, W) in HBM (pl.ANY), aliased to the input image.
    # ct_buf:    (4, tile_h, W) VMEM scratch in the image dtype.
    # sem:       (4,) DMA semaphores, one per CT channel.
    n = pl.program_id(0)
    h = pl.program_id(1)
    tile_h = ct_buf.shape[1]
    row0 = pl.multiple_of(h * tile_h, tile_h)

    x0 = img_ref[0].astype(jnp.float32)
    x1 = img_ref[1].astype(jnp.float32)
    x2 = img_ref[2].astype(jnp.float32)
    x3 = img_ref[3].astype(jnp.float32)

    def a(i, j):
        return alpha_ref[i, j]

    def safe_recip(denom):
        # Match the module: only an exactly-zero denominator is replaced.
        d = jnp.where(denom == 0.0, jnp.float32(0.001), denom)
        r = pl.reciprocal(d, approx=True)        # EUP slot
        return r * (2.0 - d * r)                 # one Newton step -> ~f32 accuracy

    copies = []

    def emit(k, nomin, denom):
        ct_buf[k] = (nomin * safe_recip(denom)).astype(ct_buf.dtype)
        cp = pltpu.make_async_copy(
            ct_buf.at[k],
            out_ref.at[n, NUM_ORIG_CHANNELS + k, pl.ds(row0, tile_h), :],
            sem.at[k])
        cp.start()                               # overlaps with next channel's compute
        copies.append(cp)

    # Exactly the terms the PyTorch forward uses for each CT channel.
    emit(0, a(0, 0) * x0 + a(0, 3) * x3,
            a(0, 5) * x0 + a(0, 8) * x3)
    emit(1, a(1, 0) * x0 + a(1, 3) * x3,
            a(1, 5) * x0 + a(1, 8) * x3 + a(1, 9))
    emit(2, a(2, 0) * x0 + a(2, 3) * x3,
            a(2, 5) * x0 + a(2, 7) * x2 + a(2, 8) * x3 + a(2, 9))
    emit(3, a(3, 1) * x1 + a(3, 3) * x3,
            a(3, 6) * x1 + a(3, 8) * x3)

    for cp in copies:                            # drain all DMAs before step ends
        cp.wait()


def _pick_tile_h(H, W, itemsize, n_batch, target_block_bytes):
    """Largest tile_h that (a) divides H, (b) is a sublane multiple (or == H),
    (c) keeps the 4-band input block under target_block_bytes, and (d) leaves
    at least 2 total parallel grid steps when a split exists (v7x dual-TC)."""
    sublane = {4: 8, 2: 16, 1: 32}.get(itemsize, 8)
    bytes_per_row = N_IN_CHANNELS * W * itemsize
    rows_budget = max(sublane, target_block_bytes // max(1, bytes_per_row))

    cands = [t for t in range(sublane, H + 1, sublane) if H % t == 0]
    if H not in cands:
        cands.append(H)                          # full dim is always a legal block
    fitting = [t for t in cands if t <= rows_budget]
    tile_h = max(fitting) if fitting else min(cands)

    if n_batch * (H // tile_h) < 2:
        splittable = [t for t in cands if H // t >= 2]
        if splittable:
            tile_h = max(splittable)
    return tile_h


def agct_forward(alpha, img):
    """agri_color_transform forward.

    alpha: (4, 10) coefficient table (rows of the module's self.alpha).
    img:   (N, 9, H, W) NCHW image; channels 0..4 pass through untouched,
           channels 5..8 are overwritten with the colour-transform bands.

    Performance notes:
      * W should preferably be a multiple of 128 (lane-dense stores / DMAs).
      * To avoid an extra copy of the 5 pass-through channels, call under
        jax.jit with the image buffer donated (the kernel aliases img to the
        output); correctness does not depend on it.
    """
    N, C, H, W = img.shape
    if C != TOTAL_CHANNELS:
        raise ValueError(f"expected {TOTAL_CHANNELS} channels, got {C}")

    itemsize = np.dtype(img.dtype).itemsize
    try:
        vmem_cap = int(pltpu.get_tpu_info().vmem_capacity_bytes)
    except Exception:
        vmem_cap = 64 * 2**20                     # conservative fallback
    # ~1/16 of VMEM for the input block: ~8 MiB on v5e/v6e, ~4 MiB on v7x.
    target_block = max(512 * 1024, min(8 * 2**20, vmem_cap // 16))

    tile_h = _pick_tile_h(H, W, itemsize, N, target_block)
    n_h = H // tile_h                             # tile_h divides H by construction

    in_block = N_IN_CHANNELS * tile_h * W * itemsize
    ct_block = N_NEW_CHANNELS * tile_h * W * itemsize
    vmem_limit = int(min(vmem_cap,
                         max(8 * 2**20, 2 * in_block + ct_block + 4 * 2**20)))

    alpha = jnp.asarray(alpha, jnp.float32)

    return pl.pallas_call(
        _agct_kernel,
        out_shape=jax.ShapeDtypeStruct((N, C, H, W), img.dtype),
        grid=(N, n_h),
        in_specs=[
            # Coefficient table lives in SMEM and is read as scalars.
            pl.BlockSpec(memory_space=pltpu.MemorySpace.SMEM),
            # Only bands 0..3 are DMA'd from HBM: one dense (4, tile_h, W)
            # block per grid step, auto double-buffered by the pipeline.
            pl.BlockSpec((None, N_IN_CHANNELS, tile_h, W),
                         lambda n, h: (n, 0, h, 0)),
        ],
        # The full 9-channel output stays in HBM (aliased to img); the kernel
        # writes only channels 5..8 via explicit per-channel DMAs, so the
        # pass-through channels are never moved.
        out_specs=pl.BlockSpec(memory_space=pl.ANY),
        scratch_shapes=[
            pltpu.VMEM((N_NEW_CHANNELS, tile_h, W), img.dtype),
            pltpu.SemaphoreType.DMA((N_NEW_CHANNELS,)),
        ],
        input_output_aliases={1: 0},              # img (input index 1) -> output 0
        compiler_params=pltpu.CompilerParams(
            dimension_semantics=("parallel", "parallel"),
            vmem_limit_bytes=vmem_limit),
    )(alpha, img)


def agct_reference(alpha, img):
    """NumPy float64 reference mirroring the PyTorch forward (CT built in f64)."""
    a = np.asarray(alpha, np.float64)
    x = np.asarray(img, np.float64)
    x0, x1, x2, x3 = x[:, 0], x[:, 1], x[:, 2], x[:, 3]

    def safe_div(n, d):
        d = np.where(d == 0.0, 0.001, d)
        return n / d

    c0 = safe_div(a[0, 0] * x0 + a[0, 3] * x3, a[0, 5] * x0 + a[0, 8] * x3)
    c1 = safe_div(a[1, 0] * x0 + a[1, 3] * x3,
                  a[1, 5] * x0 + a[1, 8] * x3 + a[1, 9])
    c2 = safe_div(a[2, 0] * x0 + a[2, 3] * x3,
                  a[2, 5] * x0 + a[2, 7] * x2 + a[2, 8] * x3 + a[2, 9])
    c3 = safe_div(a[3, 1] * x1 + a[3, 3] * x3, a[3, 6] * x1 + a[3, 8] * x3)

    out = np.array(img, copy=True)
    ct = np.stack([c0, c1, c2, c3], axis=1)
    out[:, NUM_ORIG_CHANNELS:NUM_ORIG_CHANNELS + N_NEW_CHANNELS] = \
        ct.astype(out.dtype)
    return out


if __name__ == "__main__":
    # Deterministic alpha coefficients (NDVI/SAVI/EVI/GNDVI-like initial
    # values), shape (n_channels=4, 10) as in the module's __init__.
    alpha_coeffs = jnp.array(
        [
            [1.0, 0.0, 0.0, -1.0, 0.0, 1.0, 0.0, 0.0, 1.0, 0.0],   # NDVI-like
            [1.5, 0.0, 0.0, -1.5, 0.0, 1.0, 0.0, 0.0, 1.0, 0.5],   # SAVI-like
            [2.5, 0.0, 0.0, -2.5, 0.0, 1.0, 0.0, -7.5, 6.0, 1.0],  # EVI-like
            [0.0, 1.0, 0.0, -1.0, 0.0, 0.0, 1.0, 0.0, 1.0, 0.0],   # GNDVI-like
        ],
        dtype=jnp.float32)

    # Small deterministic input: N=2, C=9 (5 original + 4 transformed bands),
    # spatial 16 x 128 (W=128 keeps stores / output DMAs lane-dense).
    key = jax.random.PRNGKey(0)
    N, H, W = 2, 16, 128
    img = jax.random.uniform(key, (N, TOTAL_CHANNELS, H, W), jnp.float32,
                             minval=0.1, maxval=1.0)
    # Keep the EVI-like denominator (x0 - 7.5*x2 + 6*x3 + 1) well away from 0
    # so the float32 kernel can be compared tightly against the float64
    # reference (a near-zero denominator would amplify f32 rounding).
    img = img.at[:, 2].multiply(0.1)

    # Snapshot for the reference BEFORE the (aliased) kernel call.
    img_np = np.asarray(img)
    ref = agct_reference(np.asarray(alpha_coeffs), img_np)

    out = jax.block_until_ready(agct_forward(alpha_coeffs, img))

    np.testing.assert_allclose(np.asarray(out), ref, rtol=1e-4, atol=1e-4)
    print("KERNEL_OK")
</pallas_src>

<mosaic_0001>
module attributes {stable_mosaic.version = 11 : i64} {
  func.func @_agct_kernel(%arg0: i32, %arg1: i32, %arg2: memref<4x10xf32, #tpu.memory_space<smem>>, %arg3: memref<1x4x16x128xf32, #tpu.memory_space<vmem>>, %arg4: memref<2x9x16x128xf32, #tpu.memory_space<any>>, %arg5: memref<4x16x128xf32, #tpu.memory_space<vmem>>, %arg6: memref<4x!tpu.dma_semaphore, #tpu.memory_space<semaphore_mem>>) attributes {dimension_semantics = [#tpu.dimension_semantics<parallel>, #tpu.dimension_semantics<parallel>], iteration_bounds = array<i64: 2, 1>, scalar_prefetch = 0 : i64, scratch_operands = 2 : i64, tpu.core_type = #tpu.core_type<tc>, window_params = [{transform_indices = @transform_0, window_bounds = array<i64: 4, 10>}, {transform_indices = @transform_1, window_bounds = array<i64: 1, 4, 16, 128>}, {}]} {
    %c16_i32 = arith.constant 16 : i32
    %0 = arith.muli %arg1, %c16_i32 : i32
    %1 = tpu.assume_multiple %0, 16 : i32
    %c0 = arith.constant 0 : index
    %c0_0 = arith.constant 0 : index
    %c0_1 = arith.constant 0 : index
    %c0_2 = arith.constant 0 : index
    %2 = vector.load %arg3[%c0, %c0_0, %c0_1, %c0_2] : memref<1x4x16x128xf32, #tpu.memory_space<vmem>>, vector<1x1x16x128xf32>
    %3 = vector.shape_cast %2 : vector<1x1x16x128xf32> to vector<16x128xf32>
    %c0_3 = arith.constant 0 : index
    %c1 = arith.constant 1 : index
    %c0_4 = arith.constant 0 : index
    %c0_5 = arith.constant 0 : index
    %4 = vector.load %arg3[%c0_3, %c1, %c0_4, %c0_5] : memref<1x4x16x128xf32, #tpu.memory_space<vmem>>, vector<1x1x16x128xf32>
    %5 = vector.shape_cast %4 : vector<1x1x16x128xf32> to vector<16x128xf32>
    %c0_6 = arith.constant 0 : index
    %c2 = arith.constant 2 : index
    %c0_7 = arith.constant 0 : index
    %c0_8 = arith.constant 0 : index
    %6 = vector.load %arg3[%c0_6, %c2, %c0_7, %c0_8] : memref<1x4x16x128xf32, #tpu.memory_space<vmem>>, vector<1x1x16x128xf32>
    %7 = vector.shape_cast %6 : vector<1x1x16x128xf32> to vector<16x128xf32>
    %c0_9 = arith.constant 0 : index
    %c3 = arith.constant 3 : index
    %c0_10 = arith.constant 0 : index
    %c0_11 = arith.constant 0 : index
    %8 = vector.load %arg3[%c0_9, %c3, %c0_10, %c0_11] : memref<1x4x16x128xf32, #tpu.memory_space<vmem>>, vector<1x1x16x128xf32>
    %9 = vector.shape_cast %8 : vector<1x1x16x128xf32> to vector<16x128xf32>
    %c0_12 = arith.constant 0 : index
    %c0_13 = arith.constant 0 : index
    %10 = memref.load %arg2[%c0_12, %c0_13] : memref<4x10xf32, #tpu.memory_space<smem>>
    %11 = vector.broadcast %10 : f32 to vector<16x128xf32>
    %12 = arith.mulf %11, %3 : vector<16x128xf32>
    %c0_14 = arith.constant 0 : index
    %c3_15 = arith.constant 3 : index
    %13 = memref.load %arg2[%c0_14, %c3_15] : memref<4x10xf32, #tpu.memory_space<smem>>
    %14 = vector.broadcast %13 : f32 to vector<16x128xf32>
    %15 = arith.mulf %14, %9 : vector<16x128xf32>
    %16 = arith.addf %12, %15 : vector<16x128xf32>
    %c0_16 = arith.constant 0 : index
    %c5 = arith.constant 5 : index
    %17 = memref.load %arg2[%c0_16, %c5] : memref<4x10xf32, #tpu.memory_space<smem>>
    %18 = vector.broadcast %17 : f32 to vector<16x128xf32>
    %19 = arith.mulf %18, %3 : vector<16x128xf32>
    %c0_17 = arith.constant 0 : index
    %c8 = arith.constant 8 : index
    %20 = memref.load %arg2[%c0_17, %c8] : memref<4x10xf32, #tpu.memory_space<smem>>
    %21 = vector.broadcast %20 : f32 to vector<16x128xf32>
    %22 = arith.mulf %21, %9 : vector<16x128xf32>
    %23 = arith.addf %19, %22 : vector<16x128xf32>
    %cst = arith.constant 0.000000e+00 : f32
    %24 = vector.broadcast %cst : f32 to vector<16x128xf32>
    %25 = arith.cmpf oeq, %23, %24 : vector<16x128xf32>
    %cst_18 = arith.constant 1.000000e-03 : f32
    %26 = vector.broadcast %cst_18 : f32 to vector<16x128xf32>
    %27 = arith.select %25, %26, %23 : vector<16x128xi1>, vector<16x128xf32>
    %28 = tpu.reciprocal %27 {approx = true} : vector<16x128xf32> -> vector<16x128xf32>
    %29 = arith.mulf %27, %28 : vector<16x128xf32>
    %cst_19 = arith.constant 2.000000e+00 : f32
    %30 = vector.broadcast %cst_19 : f32 to vector<16x128xf32>
    %31 = arith.subf %30, %29 : vector<16x128xf32>
    %32 = arith.mulf %28, %31 : vector<16x128xf32>
    %33 = arith.mulf %16, %32 : vector<16x128xf32>
    %c0_20 = arith.constant 0 : index
    %c0_21 = arith.constant 0 : index
    %c0_22 = arith.constant 0 : index
    %34 = vector.load %arg5[%c0_20, %c0_21, %c0_22] : memref<4x16x128xf32, #tpu.memory_space<vmem>>, vector<1x16x128xf32>
    %35 = vector.shape_cast %34 : vector<1x16x128xf32> to vector<16x128xf32>
    %36 = vector.shape_cast %33 : vector<16x128xf32> to vector<1x16x128xf32>
    tpu.vector_store %arg5[%c0_20, %c0_21, %c0_22], %36 {strides = array<i32>} : memref<4x16x128xf32, #tpu.memory_space<vmem>>, vector<1x16x128xf32>,
    %c0_i32 = arith.constant 0 : i32
    %c5_i32 = arith.constant 5 : i32
    %c0_i32_23 = arith.constant 0 : i32
    %c0_i32_24 = arith.constant 0 : i32
    %c0_i32_25 = arith.constant 0 : i32
    %37 = tpu.memref_slice %arg5[%c0_i32, %c0_i32_24, %c0_i32_25] : memref<4x16x128xf32, #tpu.memory_space<vmem>> -> memref<1x16x128xf32, #tpu.memory_space<vmem>>
    %38 = tpu.memref_squeeze %37 : memref<1x16x128xf32, #tpu.memory_space<vmem>> -> memref<16x128xf32, #tpu.memory_space<vmem>>
    %c0_i32_26 = arith.constant 0 : i32
    %39 = tpu.memref_slice %arg4[%arg0, %c5_i32, %1, %c0_i32_26] : memref<2x9x16x128xf32, #tpu.memory_space<any>> -> memref<1x1x16x128xf32, #tpu.memory_space<any>>
    %40 = tpu.memref_squeeze %39 : memref<1x1x16x128xf32, #tpu.memory_space<any>> -> memref<16x128xf32, #tpu.memory_space<any>>
    %41 = tpu.memref_slice %arg6[%c0_i32_23] : memref<4x!tpu.dma_semaphore, #tpu.memory_space<semaphore_mem>> -> memref<1x!tpu.dma_semaphore, #tpu.memory_space<semaphore_mem>>
    %42 = tpu.memref_squeeze %41 : memref<1x!tpu.dma_semaphore, #tpu.memory_space<semaphore_mem>> -> memref<!tpu.dma_semaphore, #tpu.memory_space<semaphore_mem>>
    tpu.enqueue_dma source(%38 : memref<16x128xf32, #tpu.memory_space<vmem>>) target(%40 : memref<16x128xf32, #tpu.memory_space<any>>) target_semaphore(%42 : memref<!tpu.dma_semaphore, #tpu.memory_space<semaphore_mem>>)
    %c1_27 = arith.constant 1 : index
    %c0_28 = arith.constant 0 : index
    %43 = memref.load %arg2[%c1_27, %c0_28] : memref<4x10xf32, #tpu.memory_space<smem>>
    %44 = vector.broadcast %43 : f32 to vector<16x128xf32>
    %45 = arith.mulf %44, %3 : vector<16x128xf32>
    %c1_29 = arith.constant 1 : index
    %c3_30 = arith.constant 3 : index
    %46 = memref.load %arg2[%c1_29, %c3_30] : memref<4x10xf32, #tpu.memory_space<smem>>
    %47 = vector.broadcast %46 : f32 to vector<16x128xf32>
    %48 = arith.mulf %47, %9 : vector<16x128xf32>
    %49 = arith.addf %45, %48 : vector<16x128xf32>
    %c1_31 = arith.constant 1 : index
    %c5_32 = arith.constant 5 : index
    %50 = memref.load %arg2[%c1_31, %c5_32] : memref<4x10xf32, #tpu.memory_space<smem>>
    %51 = vector.broadcast %50 : f32 to vector<16x128xf32>
    %52 = arith.mulf %51, %3 : vector<16x128xf32>
    %c1_33 = arith.constant 1 : index
    %c8_34 = arith.constant 8 : index
    %53 = memref.load %arg2[%c1_33, %c8_34] : memref<4x10xf32, #tpu.memory_space<smem>>
    %54 = vector.broadcast %53 : f32 to vector<16x128xf32>
    %55 = arith.mulf %54, %9 : vector<16x128xf32>
    %56 = arith.addf %52, %55 : vector<16x128xf32>
    %c1_35 = arith.constant 1 : index
    %c9 = arith.constant 9 : index
    %57 = memref.load %arg2[%c1_35, %c9] : memref<4x10xf32, #tpu.memory_space<smem>>
    %58 = vector.broadcast %57 : f32 to vector<16x128xf32>
    %59 = arith.addf %56, %58 : vector<16x128xf32>
    %cst_36 = arith.constant 0.000000e+00 : f32
    %60 = vector.broadcast %cst_36 : f32 to vector<16x128xf32>
    %61 = arith.cmpf oeq, %59, %60 : vector<16x128xf32>
    %cst_37 = arith.constant 1.000000e-03 : f32
    %62 = vector.broadcast %cst_37 : f32 to vector<16x128xf32>
    %63 = arith.select %61, %62, %59 : vector<16x128xi1>, vector<16x128xf32>
    %64 = tpu.reciprocal %63 {approx = true} : vector<16x128xf32> -> vector<16x128xf32>
    %65 = arith.mulf %63, %64 : vector<16x128xf32>
    %cst_38 = arith.constant 2.000000e+00 : f32
    %66 = vector.broadcast %cst_38 : f32 to vector<16x128xf32>
    %67 = arith.subf %66, %65 : vector<16x128xf32>
    %68 = arith.mulf %64, %67 : vector<16x128xf32>
    %69 = arith.mulf %49, %68 : vector<16x128xf32>
    %c1_39 = arith.constant 1 : index
    %c0_40 = arith.constant 0 : index
    %c0_41 = arith.constant 0 : index
    %70 = vector.load %arg5[%c1_39, %c0_40, %c0_41] : memref<4x16x128xf32, #tpu.memory_space<vmem>>, vector<1x16x128xf32>
    %71 = vector.shape_cast %70 : vector<1x16x128xf32> to vector<16x128xf32>
    %72 = vector.shape_cast %69 : vector<16x128xf32> to vector<1x16x128xf32>
    tpu.vector_store %arg5[%c1_39, %c0_40, %c0_41], %72 {strides = array<i32>} : memref<4x16x128xf32, #tpu.memory_space<vmem>>, vector<1x16x128xf32>,
    %c1_i32 = arith.constant 1 : i32
    %c6_i32 = arith.constant 6 : i32
    %c1_i32_42 = arith.constant 1 : i32
    %c0_i32_43 = arith.constant 0 : i32
    %c0_i32_44 = arith.constant 0 : i32
    %73 = tpu.memref_slice %arg5[%c1_i32, %c0_i32_43, %c0_i32_44] : memref<4x16x128xf32, #tpu.memory_space<vmem>> -> memref<1x16x128xf32, #tpu.memory_space<vmem>>
    %74 = tpu.memref_squeeze %73 : memref<1x16x128xf32, #tpu.memory_space<vmem>> -> memref<16x128xf32, #tpu.memory_space<vmem>>
    %c0_i32_45 = arith.constant 0 : i32
    %75 = tpu.memref_slice %arg4[%arg0, %c6_i32, %1, %c0_i32_45] : memref<2x9x16x128xf32, #tpu.memory_space<any>> -> memref<1x1x16x128xf32, #tpu.memory_space<any>>
    %76 = tpu.memref_squeeze %75 : memref<1x1x16x128xf32, #tpu.memory_space<any>> -> memref<16x128xf32, #tpu.memory_space<any>>
    %77 = tpu.memref_slice %arg6[%c1_i32_42] : memref<4x!tpu.dma_semaphore, #tpu.memory_space<semaphore_mem>> -> memref<1x!tpu.dma_semaphore, #tpu.memory_space<semaphore_mem>>
    %78 = tpu.memref_squeeze %77 : memref<1x!tpu.dma_semaphore, #tpu.memory_space<semaphore_mem>> -> memref<!tpu.dma_semaphore, #tpu.memory_space<semaphore_mem>>
    tpu.enqueue_dma source(%74 : memref<16x128xf32, #tpu.memory_space<vmem>>) target(%76 : memref<16x128xf32, #tpu.memory_space<any>>) target_semaphore(%78 : memref<!tpu.dma_semaphore, #tpu.memory_space<semaphore_mem>>)
    %c2_46 = arith.constant 2 : index
    %c0_47 = arith.constant 0 : index
    %79 = memref.load %arg2[%c2_46, %c0_47] : memref<4x10xf32, #tpu.memory_space<smem>>
    %80 = vector.broadcast %79 : f32 to vector<16x128xf32>
    %81 = arith.mulf %80, %3 : vector<16x128xf32>
    %c2_48 = arith.constant 2 : index
    %c3_49 = arith.constant 3 : index
    %82 = memref.load %arg2[%c2_48, %c3_49] : memref<4x10xf32, #tpu.memory_space<smem>>
    %83 = vector.broadcast %82 : f32 to vector<16x128xf32>
    %84 = arith.mulf %83, %9 : vector<16x128xf32>
    %85 = arith.addf %81, %84 : vector<16x128xf32>
    %c2_50 = arith.constant 2 : index
    %c5_51 = arith.constant 5 : index
    %86 = memref.load %arg2[%c2_50, %c5_51] : memref<4x10xf32, #tpu.memory_space<smem>>
    %87 = vector.broadcast %86 : f32 to vector<16x128xf32>
    %88 = arith.mulf %87, %3 : vector<16x128xf32>
    %c2_52 = arith.constant 2 : index
    %c7 = arith.constant 7 : index
    %89 = memref.load %arg2[%c2_52, %c7] : memref<4x10xf32, #tpu.memory_space<smem>>
    %90 = vector.broadcast %89 : f32 to vector<16x128xf32>
    %91 = arith.mulf %90, %7 : vector<16x128xf32>
    %92 = arith.addf %88, %91 : vector<16x128xf32>
    %c2_53 = arith.constant 2 : index
    %c8_54 = arith.constant 8 : index
    %93 = memref.load %arg2[%c2_53, %c8_54] : memref<4x10xf32, #tpu.memory_space<smem>>
    %94 = vector.broadcast %93 : f32 to vector<16x128xf32>
    %95 = arith.mulf %94, %9 : vector<16x128xf32>
    %96 = arith.addf %92, %95 : vector<16x128xf32>
    %c2_55 = arith.constant 2 : index
    %c9_56 = arith.constant 9 : index
    %97 = memref.load %arg2[%c2_55, %c9_56] : memref<4x10xf32, #tpu.memory_space<smem>>
    %98 = vector.broadcast %97 : f32 to vector<16x128xf32>
    %99 = arith.addf %96, %98 : vector<16x128xf32>
    %cst_57 = arith.constant 0.000000e+00 : f32
    %100 = vector.broadcast %cst_57 : f32 to vector<16x128xf32>
    %101 = arith.cmpf oeq, %99, %100 : vector<16x128xf32>
    %cst_58 = arith.constant 1.000000e-03 : f32
    %102 = vector.broadcast %cst_58 : f32 to vector<16x128xf32>
    %103 = arith.select %101, %102, %99 : vector<16x128xi1>, vector<16x128xf32>
    %104 = tpu.reciprocal %103 {approx = true} : vector<16x128xf32> -> vector<16x128xf32>
    %105 = arith.mulf %103, %104 : vector<16x128xf32>
    %cst_59 = arith.constant 2.000000e+00 : f32
    %106 = vector.broadcast %cst_59 : f32 to vector<16x128xf32>
    %107 = arith.subf %106, %105 : vector<16x128xf32>
    %108 = arith.mulf %104, %107 : vector<16x128xf32>
    %109 = arith.mulf %85, %108 : vector<16x128xf32>
    %c2_60 = arith.constant 2 : index
    %c0_61 = arith.constant 0 : index
    %c0_62 = arith.constant 0 : index
    %110 = vector.load %arg5[%c2_60, %c0_61, %c0_62] : memref<4x16x128xf32, #tpu.memory_space<vmem>>, vector<1x16x128xf32>
    %111 = vector.shape_cast %110 : vector<1x16x128xf32> to vector<16x128xf32>
    %112 = vector.shape_cast %109 : vector<16x128xf32> to vector<1x16x128xf32>
    tpu.vector_store %arg5[%c2_60, %c0_61, %c0_62], %112 {strides = array<i32>} : memref<4x16x128xf32, #tpu.memory_space<vmem>>, vector<1x16x128xf32>,
    %c2_i32 = arith.constant 2 : i32
    %c7_i32 = arith.constant 7 : i32
    %c2_i32_63 = arith.constant 2 : i32
    %c0_i32_64 = arith.constant 0 : i32
    %c0_i32_65 = arith.constant 0 : i32
    %113 = tpu.memref_slice %arg5[%c2_i32, %c0_i32_64, %c0_i32_65] : memref<4x16x128xf32, #tpu.memory_space<vmem>> -> memref<1x16x128xf32, #tpu.memory_space<vmem>>
    %114 = tpu.memref_squeeze %113 : memref<1x16x128xf32, #tpu.memory_space<vmem>> -> memref<16x128xf32, #tpu.memory_space<vmem>>
    %c0_i32_66 = arith.constant 0 : i32
    %115 = tpu.memref_slice %arg4[%arg0, %c7_i32, %1, %c0_i32_66] : memref<2x9x16x128xf32, #tpu.memory_space<any>> -> memref<1x1x16x128xf32, #tpu.memory_space<any>>
    %116 = tpu.memref_squeeze %115 : memref<1x1x16x128xf32, #tpu.memory_space<any>> -> memref<16x128xf32, #tpu.memory_space<any>>
    %117 = tpu.memref_slice %arg6[%c2_i32_63] : memref<4x!tpu.dma_semaphore, #tpu.memory_space<semaphore_mem>> -> memref<1x!tpu.dma_semaphore, #tpu.memory_space<semaphore_mem>>
    %118 = tpu.memref_squeeze %117 : memref<1x!tpu.dma_semaphore, #tpu.memory_space<semaphore_mem>> -> memref<!tpu.dma_semaphore, #tpu.memory_space<semaphore_mem>>
    tpu.enqueue_dma source(%114 : memref<16x128xf32, #tpu.memory_space<vmem>>) target(%116 : memref<16x128xf32, #tpu.memory_space<any>>) target_semaphore(%118 : memref<!tpu.dma_semaphore, #tpu.memory_space<semaphore_mem>>)
    %c3_67 = arith.constant 3 : index
    %c1_68 = arith.constant 1 : index
    %119 = memref.load %arg2[%c3_67, %c1_68] : memref<4x10xf32, #tpu.memory_space<smem>>
    %120 = vector.broadcast %119 : f32 to vector<16x128xf32>
    %121 = arith.mulf %120, %5 : vector<16x128xf32>
    %c3_69 = arith.constant 3 : index
    %c3_70 = arith.constant 3 : index
    %122 = memref.load %arg2[%c3_69, %c3_70] : memref<4x10xf32, #tpu.memory_space<smem>>
    %123 = vector.broadcast %122 : f32 to vector<16x128xf32>
    %124 = arith.mulf %123, %9 : vector<16x128xf32>
    %125 = arith.addf %121, %124 : vector<16x128xf32>
    %c3_71 = arith.constant 3 : index
    %c6 = arith.constant 6 : index
    %126 = memref.load %arg2[%c3_71, %c6] : memref<4x10xf32, #tpu.memory_space<smem>>
    %127 = vector.broadcast %126 : f32 to vector<16x128xf32>
    %128 = arith.mulf %127, %5 : vector<16x128xf32>
    %c3_72 = arith.constant 3 : index
    %c8_73 = arith.constant 8 : index
    %129 = memref.load %arg2[%c3_72, %c8_73] : memref<4x10xf32, #tpu.memory_space<smem>>
    %130 = vector.broadcast %129 : f32 to vector<16x128xf32>
    %131 = arith.mulf %130, %9 : vector<16x128xf32>
    %132 = arith.addf %128, %131 : vector<16x128xf32>
    %cst_74 = arith.constant 0.000000e+00 : f32
    %133 = vector.broadcast %cst_74 : f32 to vector<16x128xf32>
    %134 = arith.cmpf oeq, %132, %133 : vector<16x128xf32>
    %cst_75 = arith.constant 1.000000e-03 : f32
    %135 = vector.broadcast %cst_75 : f32 to vector<16x128xf32>
    %136 = arith.select %134, %135, %132 : vector<16x128xi1>, vector<16x128xf32>
    %137 = tpu.reciprocal %136 {approx = true} : vector<16x128xf32> -> vector<16x128xf32>
    %138 = arith.mulf %136, %137 : vector<16x128xf32>
    %cst_76 = arith.constant 2.000000e+00 : f32
    %139 = vector.broadcast %cst_76 : f32 to vector<16x128xf32>
    %140 = arith.subf %139, %138 : vector<16x128xf32>
    %141 = arith.mulf %137, %140 : vector<16x128xf32>
    %142 = arith.mulf %125, %141 : vector<16x128xf32>
    %c3_77 = arith.constant 3 : index
    %c0_78 = arith.constant 0 : index
    %c0_79 = arith.constant 0 : index
    %143 = vector.load %arg5[%c3_77, %c0_78, %c0_79] : memref<4x16x128xf32, #tpu.memory_space<vmem>>, vector<1x16x128xf32>
    %144 = vector.shape_cast %143 : vector<1x16x128xf32> to vector<16x128xf32>
    %145 = vector.shape_cast %142 : vector<16x128xf32> to vector<1x16x128xf32>
    tpu.vector_store %arg5[%c3_77, %c0_78, %c0_79], %145 {strides = array<i32>} : memref<4x16x128xf32, #tpu.memory_space<vmem>>, vector<1x16x128xf32>,
    %c3_i32 = arith.constant 3 : i32
    %c8_i32 = arith.constant 8 : i32
    %c3_i32_80 = arith.constant 3 : i32
    %c0_i32_81 = arith.constant 0 : i32
    %c0_i32_82 = arith.constant 0 : i32
    %146 = tpu.memref_slice %arg5[%c3_i32, %c0_i32_81, %c0_i32_82] : memref<4x16x128xf32, #tpu.memory_space<vmem>> -> memref<1x16x128xf32, #tpu.memory_space<vmem>>
    %147 = tpu.memref_squeeze %146 : memref<1x16x128xf32, #tpu.memory_space<vmem>> -> memref<16x128xf32, #tpu.memory_space<vmem>>
    %c0_i32_83 = arith.constant 0 : i32
    %148 = tpu.memref_slice %arg4[%arg0, %c8_i32, %1, %c0_i32_83] : memref<2x9x16x128xf32, #tpu.memory_space<any>> -> memref<1x1x16x128xf32, #tpu.memory_space<any>>
    %149 = tpu.memref_squeeze %148 : memref<1x1x16x128xf32, #tpu.memory_space<any>> -> memref<16x128xf32, #tpu.memory_space<any>>
    %150 = tpu.memref_slice %arg6[%c3_i32_80] : memref<4x!tpu.dma_semaphore, #tpu.memory_space<semaphore_mem>> -> memref<1x!tpu.dma_semaphore, #tpu.memory_space<semaphore_mem>>
    %151 = tpu.memref_squeeze %150 : memref<1x!tpu.dma_semaphore, #tpu.memory_space<semaphore_mem>> -> memref<!tpu.dma_semaphore, #tpu.memory_space<semaphore_mem>>
    tpu.enqueue_dma source(%147 : memref<16x128xf32, #tpu.memory_space<vmem>>) target(%149 : memref<16x128xf32, #tpu.memory_space<any>>) target_semaphore(%151 : memref<!tpu.dma_semaphore, #tpu.memory_space<semaphore_mem>>)
    %c0_i32_84 = arith.constant 0 : i32
    %c5_i32_85 = arith.constant 5 : i32
    %c0_i32_86 = arith.constant 0 : i32
    %c0_i32_87 = arith.constant 0 : i32
    %c0_i32_88 = arith.constant 0 : i32
    %152 = tpu.memref_slice %arg5[%c0_i32_84, %c0_i32_87, %c0_i32_88] : memref<4x16x128xf32, #tpu.memory_space<vmem>> -> memref<1x16x128xf32, #tpu.memory_space<vmem>>
    %153 = tpu.memref_squeeze %152 : memref<1x16x128xf32, #tpu.memory_space<vmem>> -> memref<16x128xf32, #tpu.memory_space<vmem>>
    %c0_i32_89 = arith.constant 0 : i32
    %154 = tpu.memref_slice %arg4[%arg0, %c5_i32_85, %1, %c0_i32_89] : memref<2x9x16x128xf32, #tpu.memory_space<any>> -> memref<1x1x16x128xf32, #tpu.memory_space<any>>
    %155 = tpu.memref_squeeze %154 : memref<1x1x16x128xf32, #tpu.memory_space<any>> -> memref<16x128xf32, #tpu.memory_space<any>>
    %156 = tpu.memref_slice %arg6[%c0_i32_86] : memref<4x!tpu.dma_semaphore, #tpu.memory_space<semaphore_mem>> -> memref<1x!tpu.dma_semaphore, #tpu.memory_space<semaphore_mem>>
    %157 = tpu.memref_squeeze %156 : memref<1x!tpu.dma_semaphore, #tpu.memory_space<semaphore_mem>> -> memref<!tpu.dma_semaphore, #tpu.memory_space<semaphore_mem>>
    tpu.wait_dma2 semaphore(%157 : memref<!tpu.dma_semaphore, #tpu.memory_space<semaphore_mem>>) src(%153 : memref<16x128xf32, #tpu.memory_space<vmem>>) dst(%155 : memref<16x128xf32, #tpu.memory_space<any>>)
    %c1_i32_90 = arith.constant 1 : i32
    %c6_i32_91 = arith.constant 6 : i32
    %c1_i32_92 = arith.constant 1 : i32
    %c0_i32_93 = arith.constant 0 : i32
    %c0_i32_94 = arith.constant 0 : i32
    %158 = tpu.memref_slice %arg5[%c1_i32_90, %c0_i32_93, %c0_i32_94] : memref<4x16x128xf32, #tpu.memory_space<vmem>> -> memref<1x16x128xf32, #tpu.memory_space<vmem>>
    %159 = tpu.memref_squeeze %158 : memref<1x16x128xf32, #tpu.memory_space<vmem>> -> memref<16x128xf32, #tpu.memory_space<vmem>>
    %c0_i32_95 = arith.constant 0 : i32
    %160 = tpu.memref_slice %arg4[%arg0, %c6_i32_91, %1, %c0_i32_95] : memref<2x9x16x128xf32, #tpu.memory_space<any>> -> memref<1x1x16x128xf32, #tpu.memory_space<any>>
    %161 = tpu.memref_squeeze %160 : memref<1x1x16x128xf32, #tpu.memory_space<any>> -> memref<16x128xf32, #tpu.memory_space<any>>
    %162 = tpu.memref_slice %arg6[%c1_i32_92] : memref<4x!tpu.dma_semaphore, #tpu.memory_space<semaphore_mem>> -> memref<1x!tpu.dma_semaphore, #tpu.memory_space<semaphore_mem>>
    %163 = tpu.memref_squeeze %162 : memref<1x!tpu.dma_semaphore, #tpu.memory_space<semaphore_mem>> -> memref<!tpu.dma_semaphore, #tpu.memory_space<semaphore_mem>>
    tpu.wait_dma2 semaphore(%163 : memref<!tpu.dma_semaphore, #tpu.memory_space<semaphore_mem>>) src(%159 : memref<16x128xf32, #tpu.memory_space<vmem>>) dst(%161 : memref<16x128xf32, #tpu.memory_space<any>>)
    %c2_i32_96 = arith.constant 2 : i32
    %c7_i32_97 = arith.constant 7 : i32
    %c2_i32_98 = arith.constant 2 : i32
    %c0_i32_99 = arith.constant 0 : i32
    %c0_i32_100 = arith.constant 0 : i32
    %164 = tpu.memref_slice %arg5[%c2_i32_96, %c0_i32_99, %c0_i32_100] : memref<4x16x128xf32, #tpu.memory_space<vmem>> -> memref<1x16x128xf32, #tpu.memory_space<vmem>>
    %165 = tpu.memref_squeeze %164 : memref<1x16x128xf32, #tpu.memory_space<vmem>> -> memref<16x128xf32, #tpu.memory_space<vmem>>
    %c0_i32_101 = arith.constant 0 : i32
    %166 = tpu.memref_slice %arg4[%arg0, %c7_i32_97, %1, %c0_i32_101] : memref<2x9x16x128xf32, #tpu.memory_space<any>> -> memref<1x1x16x128xf32, #tpu.memory_space<any>>
    %167 = tpu.memref_squeeze %166 : memref<1x1x16x128xf32, #tpu.memory_space<any>> -> memref<16x128xf32, #tpu.memory_space<any>>
    %168 = tpu.memref_slice %arg6[%c2_i32_98] : memref<4x!tpu.dma_semaphore, #tpu.memory_space<semaphore_mem>> -> memref<1x!tpu.dma_semaphore, #tpu.memory_space<semaphore_mem>>
    %169 = tpu.memref_squeeze %168 : memref<1x!tpu.dma_semaphore, #tpu.memory_space<semaphore_mem>> -> memref<!tpu.dma_semaphore, #tpu.memory_space<semaphore_mem>>
    tpu.wait_dma2 semaphore(%169 : memref<!tpu.dma_semaphore, #tpu.memory_space<semaphore_mem>>) src(%165 : memref<16x128xf32, #tpu.memory_space<vmem>>) dst(%167 : memref<16x128xf32, #tpu.memory_space<any>>)
    %c3_i32_102 = arith.constant 3 : i32
    %c8_i32_103 = arith.constant 8 : i32
    %c3_i32_104 = arith.constant 3 : i32
    %c0_i32_105 = arith.constant 0 : i32
    %c0_i32_106 = arith.constant 0 : i32
    %170 = tpu.memref_slice %arg5[%c3_i32_102, %c0_i32_105, %c0_i32_106] : memref<4x16x128xf32, #tpu.memory_space<vmem>> -> memref<1x16x128xf32, #tpu.memory_space<vmem>>
    %171 = tpu.memref_squeeze %170 : memref<1x16x128xf32, #tpu.memory_space<vmem>> -> memref<16x128xf32, #tpu.memory_space<vmem>>
    %c0_i32_107 = arith.constant 0 : i32
    %172 = tpu.memref_slice %arg4[%arg0, %c8_i32_103, %1, %c0_i32_107] : memref<2x9x16x128xf32, #tpu.memory_space<any>> -> memref<1x1x16x128xf32, #tpu.memory_space<any>>
    %173 = tpu.memref_squeeze %172 : memref<1x1x16x128xf32, #tpu.memory_space<any>> -> memref<16x128xf32, #tpu.memory_space<any>>
    %174 = tpu.memref_slice %arg6[%c3_i32_104] : memref<4x!tpu.dma_semaphore, #tpu.memory_space<semaphore_mem>> -> memref<1x!tpu.dma_semaphore, #tpu.memory_space<semaphore_mem>>
    %175 = tpu.memref_squeeze %174 : memref<1x!tpu.dma_semaphore, #tpu.memory_space<semaphore_mem>> -> memref<!tpu.dma_semaphore, #tpu.memory_space<semaphore_mem>>
    tpu.wait_dma2 semaphore(%175 : memref<!tpu.dma_semaphore, #tpu.memory_space<semaphore_mem>>) src(%171 : memref<16x128xf32, #tpu.memory_space<vmem>>) dst(%173 : memref<16x128xf32, #tpu.memory_space<any>>)
    return
  }
  func.func @transform_0(%arg0: i32, %arg1: i32) -> (i32, i32) {
    %c0_i32 = arith.constant 0 : i32
    %c0_i32_0 = arith.constant 0 : i32
    %c0_i32_1 = arith.constant 0 : i32
    return %c0_i32, %c0_i32_0 : i32, i32
  }
  func.func @transform_1(%arg0: i32, %arg1: i32) -> (i32, i32, i32, i32) {
    %c0_i32 = arith.constant 0 : i32
    %c0_i32_0 = arith.constant 0 : i32
    %c0_i32_1 = arith.constant 0 : i32
    return %arg0, %c0_i32, %arg1, %c0_i32_0 : i32, i32, i32, i32
  }
}

</mosaic_0001>

<bundles_post_ra>
// kernel: tpu_custom_call.1
= control target key start
LH: loop header
LB: loop body
LE: loop exit
PB: predicated region body
PF: predicated region fallthrough
CT: control target
= control target key end

     0   :  { %7 = vsyncpa [#allocation6], 0  ;;  %s1191_s0 = inlined_call_operand.vmem [shape: f32[4,10], index: 0, kind: input, shape index: {}]   ;;  %s1192_s1 = inlined_call_operand.hbm [shape: f32[2,9,16,128], index: 1, kind: input, shape index: {}, may-alias: {1,2}]   ;;  %s1193_s2 = inlined_call_operand.hbm [shape: f32[2,9,16,128], index: 2, kind: output, shape index: {}, may-alias: {1,2}]  }
   0x1   :  { %8 = vsyncpa [#allocation5], 0 }
   0x2   :  { %10 = vsyncpa [#allocation5 + $0x1], 0  ;;  %s850_s9 = smov 0   ;;  %s852_s10 = smov 0  }
   0x3   :  { %s854_s11 = smov 0   ;;  %s856_s12 = smov 0  }
   0x4   :  { %s858_s13 = smov 0   ;;  %s860_s14 = smov 0  }
   0x5 LB: > { %s485_s15 = sadd.s32 4294967295, %s825_s14   ;;  %s48_s16 = sadd.s32 1, %s813_s11  ;;  %s825_s14 = sphi %s860_s14, %s16_s14   ;;  %s821_s13 = sphi %s858_s13, %s1205_s13   ;;  %s817_s12 = sphi %s856_s12, %s1204_s12   ;;  %s813_s11 = sphi %s854_s11, %s1203_s11   ;;  %s809_s10 = sphi %s852_s10, %s1202_s10   ;;  %s805_s9 = sphi %s850_s9, %s1201_s9  }
   0x6   : > { %p54_p0 = scmp.ne.s32.totalorder %s813_s11, %s809_s10  ;;  %p55_p1 = scmp.eq.s32.totalorder %s825_s14, 0 }
   0x7   : > { %p61_p2 = scmp.ne.s32.totalorder %s809_s10, %s805_s9  ;;  %p884_p3 = scmp.eq.s32.totalorder %s485_s15, 0 }
   0x8   : > { %p888_p4 = por %p55_p1, %p54_p0  ;;  %p543_p7 = scmp.ge.s32.totalorder %s825_s14, 1 }
   0x9   : > { %p895_p6 = por %p884_p3, %p61_p2  ;;  %s76_s22 = sshll.u32 %s1191_s0, 4  ;;  %s77_s22 = int_to_ptr.vmem [resolvable:$true] %s76_s22 }
   0xa   : > { %p536_p8 = pnand %p543_p7, %p884_p3  ;;  %p545_p9 = scmp.lt.s32.totalorder %s825_s14, 2 }
   0xb   : > { %s1197_s19 = scalar_select %p895_p6, 1, 0 }
   0xc   : > { %s618_s23 = scalar_lea.vmem %s77_s22, 64  ;;  %p620_p11 = pneg %p536_p8 }
   0xd   : > { %p619_p10 = scmp.ne.s32.totalorder %s77_s22, %s618_s23  ;;  %p626_p0 = scmp.lt.s32.totalorder %s77_s22, %s77_s22 }
   0xe   : > { %p627_p1 = scmp.lt.s32.totalorder %s618_s23, %s618_s23 }
   0xf   : > { %p621_p12 = pnand %p620_p11, %p619_p10 }
  0x10   : > { %p628_p2 = por %p627_p1, %p626_p0 }
  0x11   : > { %p622_p13 = pneg %p621_p12 }
  0x13   : > { %p629_p5 = pnand %p628_p2, %p622_p13 }
  0x15   : > { %632 = shalt.err (!%p629_p5)
}
  0x16   : > { %s827_s24 = smov [#allocation4]   ;;  %p910_p7 = pnand %p545_p9, %p888_p4 }
  0x17   : > { %538 = dma.vmem_to_smem (!%p536_p8), %s77_s22, 64, %s827_s24, [#allocation6]  }
  0x18   : > { %s87_s26 = sand.u32 1, %s813_s11   ;;  %s25_s27 = sadd.s32 1, %s821_s13 }
  0x19   : > { %p27_p5 = scmp.ge.s32.totalorder %s25_s27, 2  ;;  %s490_s28 = sshll.u32 %s87_s26, 6 }
  0x1a   : > { %s528_s29 = smul.u32 2304, %s821_s13  ;;  %s91_s6 = scalar_lea.vmem [#allocation7], %s490_s28 }
  0x1b   : > { %s1207_s27 = smov (%p27_p5, %s25_s27), 0  ;;  %s100_s7 = sshll.u32 %s91_s6, 4  ;;  %s926_s7 = int_to_ptr.vmem [resolvable:$true] %s100_s7 }
  0x1c   : > { %s922_s4 = scalar_lea.hbm %s1192_s1, %s528_s29  ;;  %s43_s5 = ssub.s32 %s821_s13, %s1207_s27 }
  0x1d   : > { %p46_p4 = scmp.eq.s32.totalorder %s43_s5, 0  ;;  %s933_s9 = scalar_lea.sflag [#allocation5], %s87_s26 }
  0x1e   : > { %s633_s15 = scalar_lea.hbm %s922_s4, 1024  ;;  %p635_p9 = pneg %p910_p7 }
  0x1f   : > { %s931_s8 = scalar_select %p46_p4, %s813_s11, %s48_s16  }
  0x20   : > { %p634_p8 = scmp.ne.s32.totalorder %s922_s4, %s633_s15  ;;  %s638_s21 = scalar_lea.hbm %s1192_s1, 4608 }
  0x21   : > { %p639_p12 = scmp.lt.u32.totalorder %s922_s4, %s1192_s1  ;;  %p640_p13 = scmp.lt.u32.totalorder %s638_s21, %s633_s15 }
  0x22   : > { %p636_p10 = pnand %p635_p9, %p634_p8  ;;  %p642_p1 = scmp.lt.u32.totalorder %s633_s15, %s922_s4 }
  0x23   : > { %p641_p0 = por %p640_p13, %p639_p12 }
  0x24   : > { %p637_p11 = pneg %p636_p10 }
  0x25   : > { %p643_p2 = por %p642_p1, %p641_p0 }
  0x27   : > { %p644_p5 = pnand %p643_p2, %p637_p11 }
  0x29   : > { %647 = shalt.err (!%p644_p5)
}
  0x2a   : > { %s648_s16 = scalar_lea.vmem %s926_s7, 1024  ;;  %s828_s24 = smov [#allocation7]  }
  0x2b   : > { %p649_p4 = scmp.ne.s32.totalorder %s926_s7, %s648_s16  ;;  %s653_s26 = sshll.u32 %s828_s24, 4  ;;  %s654_s26 = int_to_ptr.vmem [resolvable:$false] %s653_s26 }
  0x2c   : > { %s655_s28 = scalar_lea.vmem %s654_s26, 2048  ;;  %p656_p6 = scmp.lt.s32.totalorder %s926_s7, %s654_s26 }
  0x2d   : > { %p651_p8 = pnand %p649_p4, %p635_p9  ;;  %p657_p12 = scmp.lt.s32.totalorder %s655_s28, %s648_s16 }
  0x2f   : > { %p652_p10 = pneg %p651_p8  ;;  %p658_p13 = por %p657_p12, %p656_p6 }
  0x31   : > { %p659_p0 = pnand %p658_p13, %p652_p10 }
  0x33   : > { %662 = shalt.err (!%p659_p0)
}
  0x34   : > { %s829_s29 = smov 128   ;;  %s830_s30 = smov 8  }
  0x35   : > { %542 = dma.hbm_to_vmem [thread:$0]  (!%p910_p7), %s922_s4, 1024, %s926_s7, %s933_s9, %s829_s29, %s829_s29, %s830_s30  }
  0x36   : > { %p1199_p9 = scmp.lt.s32.totalorder %s825_s14, 1 }
  0x38   : > { %110 = sbr.rel (%p1199_p9) target bundleno = 187 (0xbb), region = 28 }
  0x3f   : > { %788 = dma.done.wait (%p884_p3), [#allocation6], 64  }
  0x40   : > { %790 = vsyncadd (%p884_p3), [#allocation6], 4294967232  ;;  %s116_s3 = sand.u32 1, %s809_s10   ;;  %p1200_p6 = scmp.ne.s32.totalorder %s1197_s19, 0 }
  0x41   : > { %s495_s5 = sshll.u32 %s116_s3, 6  ;;  %s117_s6 = scalar_lea.sflag [#allocation5], %s116_s3 }
  0x42   : > { %s968_s15 = scalar_lea.vmem [#allocation7], %s495_s5 }
  0x43   : > { %792 = dma.done.wait (%p1200_p6), %s117_s6, 1024  }
  0x44   : > { %794 = vsyncadd (%p1200_p6), %s117_s6, 4294966272 }
  0x45   : > { %125 = sfence }
  0x46   : > { %s503_s25 = sld [smem:[#allocation4 + $0x5]]  ;;  %s504_s17 = sld [smem:[#allocation4 + $0x8]]  ;;  %v975_v0 = vld [vmem:[%s968_s15] sm:$0xff]  ;;  %v978_v1 = vld [vmem:[%s968_s15 + $0x30] sm:$0xff]  ;;  %v981_v2 = vld [vmem:[%s968_s15 + $0x8] sm:$0xff] }
  0x47   : > { %v984_v3 = vld [vmem:[%s968_s15 + $0x38] sm:$0xff]  ;;  %s508_s4 = sld [smem:[#allocation4 + $0x85]]  ;;  %s509_s19 = sld [smem:[#allocation4 + $0x88]]  ;;  %v498_v22 = vld [vmem:[%s968_s15 + $0x20] sm:$0xff]  ;;  %v499_v30 = vld [vmem:[%s968_s15 + $0x28] sm:$0xff] }
  0x48   : > { %s988_s7 = sld [smem:[#allocation4]]  ;;  %s992_s9 = sld [smem:[#allocation4 + $0x89]]  ;;  %v1041_v55 = vld [vmem:[%s968_s15 + $0x10] sm:$0xff]  ;;  %v1047_v60 = vld [vmem:[%s968_s15 + $0x18] sm:$0xff] }
  0x49   : > { %s994_s18 = sld [smem:[#allocation4 + $0x3]]  ;;  %s996_s20 = sld [smem:[#allocation4 + $0x105]] }
  0x4a   : > { %s998_s21 = sld [smem:[#allocation4 + $0x107]]  ;;  %s1000_s22 = sld [smem:[#allocation4 + $0x108]] }
  0x4b   : > { %s1003_s23 = sld [smem:[#allocation4 + $0x109]]  ;;  %s1013_s16 = sld [smem:[#allocation4 + $0x80]] }
  0x4c   : > { %v159_v4 = vstv %s503_s25  ;;  %v163_v5 = vstv %s504_s17  ;;  %s1019_s24 = sld [smem:[#allocation4 + $0x186]]  ;;  %s1021_s26 = sld [smem:[#allocation4 + $0x188]] }
  0x4d   : > { %v160_v6 = vmul.f32 %v159_v4, %v975_v0  ;;  %v164_v7 = vmul.f32 %v978_v1, %v163_v5  ;;  %v161_v8 = vmul.f32 %v159_v4, %v981_v2  ;;  %v165_v9 = vmul.f32 %v984_v3, %v163_v5  ;;  %s1028_s28 = sld [smem:[#allocation4 + $0x83]]  ;;  %s505_s29 = smul.u32 2304, %s817_s12 }
  0x4e   : > { %v211_v13 = vstv %s508_s4  ;;  %v215_v16 = vstv %s509_s19  ;;  %v149_v20 = vstv %s988_s7  ;;  %v221_v21 = vstv %s992_s9  ;;  %s1049_s30 = sld [smem:[#allocation4 + $0x100]]  ;;  %s1051_s12 = sld [smem:[#allocation4 + $0x103]] }
  0x4f   : > { %v166_v10 = vadd.f32 %v164_v7, %v160_v6  ;;  %v167_v11 = vadd.f32 %v165_v9, %v161_v8  ;;  %v212_v15 = vmul.f32 %v211_v13, %v975_v0  ;;  %v216_v17 = vmul.f32 %v978_v1, %v215_v16  ;;  %s1056_s6 = scalar_lea.hbm %s1193_s2, %s505_s29  ;;  %s831_s25 = smov [#allocation2]  }
  0x50   : > { %v213_v18 = vmul.f32 %v211_v13, %v981_v2  ;;  %v217_v19 = vmul.f32 %v984_v3, %v215_v16  ;;  %v268_v23 = vstv %s996_s20  ;;  %v153_v24 = vstv %s994_s18  ;;  %s196_s17 = sshll.u32 %s831_s25, 4  ;;  %s1068_s15 = scalar_lea.hbm %s1056_s6, 1280  ;;  %s1070_s17 = int_to_ptr.vmem [resolvable:$true] %s196_s17 }
  0x51   : > { %vm168_vm0 = vcmp.eq.f32.partialorder %v166_v10, 0.0  ;;  %vm169_vm1 = vcmp.eq.f32.partialorder %v167_v11, 0.0  ;;  %v218_v25 = vadd.f32 %v216_v17, %v212_v15  ;;  %v269_v27 = vmul.f32 %v268_v23, %v975_v0  ;;  %s1076_s4 = sld [smem:[#allocation4 + $0x181]]  ;;  %s1078_s19 = sld [smem:[#allocation4 + $0x183]] }
  0x52   : > { %v170_v12 = vsel %vm168_vm0, 0.001, %v166_v10  ;;  %v171_v14 = vsel %vm169_vm1, 0.001, %v167_v11  ;;  %v219_v26 = vadd.f32 %v217_v19, %v213_v18  ;;  %v272_v28 = vstv %s998_s21  ;;  %s663_s7 = scalar_lea.vmem %s1070_s17, 256  ;;  %s1087_s9 = scalar_lea.vmem %s1070_s17, 1024 }
  0x53   : > { %602 = vrcp.f32 %v170_v12  ;;  %v278_v29 = vstv %s1000_s22  ;;  %v150_v31 = vmul.f32 %v149_v20, %v975_v0  ;;  %v222_v32 = vadd.f32 %v221_v21, %v218_v25  ;;  %p664_p3 = scmp.ne.s32.totalorder %s1070_s17, %s663_s7  ;;  %p668_p7 = scmp.lt.s32.totalorder %s1070_s17, %s1070_s17 }
  0x54   : > { %604 = vrcp.f32 %v171_v14  ;;  %v223_v33 = vadd.f32 %v221_v21, %v219_v26  ;;  %v273_v34 = vmul.f32 %v498_v22, %v272_v28  ;;  %v154_v35 = vmul.f32 %v978_v1, %v153_v24  ;;  %p669_p11 = scmp.lt.s32.totalorder %s1087_s9, %s663_s7 }
  0x55   : > { %v151_v36 = vmul.f32 %v149_v20, %v981_v2  ;;  %v279_v37 = vmul.f32 %v978_v1, %v278_v29  ;;  %v270_v38 = vmul.f32 %v268_v23, %v981_v2  ;;  %vm224_vm2 = vcmp.eq.f32.partialorder %v222_v32, 0.0 }
  0x56   : > { %vm225_vm3 = vcmp.eq.f32.partialorder %v223_v33, 0.0  ;;  %v275_v39 = vadd.f32 %v273_v34, %v269_v27  ;;  %v274_v40 = vmul.f32 %v499_v30, %v272_v28  ;;  %v1030_v41 = vsel %vm224_vm2, 0.001, %v222_v32  ;;  %p670_p1 = por %p669_p11, %p668_p7 }
  0x57   : > { %v1032_v42 = vsel %vm225_vm3, 0.001, %v223_v33  ;;  %v284_v43 = vstv %s1003_s23  ;;  %v280_v44 = vmul.f32 %v984_v3, %v278_v29  ;;  %v155_v46 = vmul.f32 %v984_v3, %v153_v24 }
  0x58   : > { %606 = vrcp.f32 %v1030_v41  ;;  %v281_v47 = vadd.f32 %v279_v37, %v275_v39  ;;  %v276_v48 = vadd.f32 %v274_v40, %v270_v38  ;;  %v156_v51 = vadd.f32 %v154_v35, %v150_v31  ;;  %p671_p2 = pnand %p670_p1, %p664_p3 }
  0x59   : > { %608 = vrcp.f32 %v1032_v42  ;;  %v201_v57 = vstv %s1013_s16  ;;  %v331_v58 = vstv %s1019_s24  ;;  %v335_v59 = vstv %s1021_s26 }
  0x5a   : > { %v285_v53 = vadd.f32 %v284_v43, %v281_v47  ;;  %v282_v54 = vadd.f32 %v280_v44, %v276_v48  ;;  %v157_v61 = vadd.f32 %v155_v46, %v151_v36  ;;  %v332_v6 = vmul.f32 %v1041_v55, %v331_v58 }
  0x5b   : > { %v336_v7 = vmul.f32 %v978_v1, %v335_v59  ;;  %v205_v9 = vstv %s1028_s28  ;;  %v333_v13 = vmul.f32 %v1047_v60, %v331_v58  ;;  %v337_v15 = vmul.f32 %v984_v3, %v335_v59 }
  0x5c   : > { %vm287_vm4 = vcmp.eq.f32.partialorder %v285_v53, 0.0  ;;  %v286_v63 = vadd.f32 %v284_v43, %v282_v54  ;;  %v202_v16 = vmul.f32 %v201_v57, %v975_v0  ;;  %v206_v17 = vmul.f32 %v978_v1, %v205_v9 }
  0x5d   : > { %v603_v45 = vpop.eup %602  ;;  %v1058_v5 = vsel %vm287_vm4, 0.001, %v285_v53  ;;  %v203_v19 = vmul.f32 %v201_v57, %v981_v2  ;;  %v207_v20 = vmul.f32 %v984_v3, %v205_v9  ;;  %v339_v22 = vadd.f32 %v337_v15, %v333_v13 }
  0x5e   : > { %v605_v49 = vpop.eup %604  ;;  %v174_v50 = vmul.f32 %v603_v45, %v170_v12  ;;  %610 = vrcp.f32 %v1058_v5  ;;  %vm288_vm5 = vcmp.eq.f32.partialorder %v286_v63, 0.0  ;;  %v338_v12 = vadd.f32 %v336_v7, %v332_v6 }
  0x5f   : > { %v175_v52 = vmul.f32 %v605_v49, %v171_v14  ;;  %v1064_v11 = vsel %vm288_vm5, 0.001, %v286_v63 }
  0x60   : > { %v176_v56 = vsub.f32 2.0, %v174_v50  ;;  %612 = vrcp.f32 %v1064_v11  ;;  %vm340_vm6 = vcmp.eq.f32.partialorder %v338_v12, 0.0 }
  0x61   : > { %v177_v62 = vsub.f32 2.0, %v175_v52  ;;  %v1082_v21 = vsel %vm340_vm6, 0.001, %v338_v12 }
  0x62   : > { %v178_v4 = vmul.f32 %v603_v45, %v176_v56  ;;  %v607_v18 = vpop.eup %606 }
  0x63   : > { %v179_v8 = vmul.f32 %v605_v49, %v177_v62  ;;  %v609_v23 = vpop.eup %608 }
  0x64   : > { %v180_v10 = vmul.f32 %v178_v4, %v156_v51 }
  0x65   : > { %v181_v14 = vmul.f32 %v179_v8, %v157_v61 }
  0x66   : > { %182 = vst [vmem:[#allocation2] sm:$0xff] %v180_v10 }
  0x67   : > { %183 = vst [vmem:[#allocation2 + $0x8] sm:$0xff] %v181_v14 }
  0x68   : > { %674 = shalt.err (!%p671_p2)  }
  0x69   : > { %s1093_s18 = scalar_lea.hbm %s1056_s6, 1536  ;;  %s1100_s22 = scalar_lea.hbm %s1193_s2, 4608 }
  0x6a   : > { %p676_p5 = scmp.ne.s32.totalorder %s1068_s15, %s1093_s18  ;;  %p678_p4 = scmp.lt.u32.totalorder %s1068_s15, %s1193_s2 }
  0x6b   : > { %p679_p8 = scmp.lt.u32.totalorder %s1100_s22, %s1093_s18  ;;  %p681_p12 = scmp.lt.u32.totalorder %s1093_s18, %s1068_s15 }
  0x6d   : > { %p680_p10 = por %p679_p8, %p678_p4 }
  0x6f   : > { %p682_p13 = por %p681_p12, %p680_p10 }
  0x71   : > { %p683_p0 = pnand %p682_p13, %p676_p5 }
  0x73   : > { %686 = shalt.err (!%p683_p0)  }
  0x74   : > { %199 = dma.vmem_to_hbm [thread:$0]  %s1070_s17, 256, %s1068_s15, [#allocation3]  ;;  %v230_v24 = vmul.f32 %v607_v18, %v1030_v41  ;;  %614 = vrcp.f32 %v1082_v21  ;;  %v231_v25 = vmul.f32 %v609_v23, %v1032_v42  ;;  %v258_v26 = vstv %s1049_s30  ;;  %v611_v36 = vpop.eup %610 }
  0x75   : > { %v262_v27 = vstv %s1051_s12  ;;  %vm341_vm7 = vcmp.eq.f32.partialorder %v339_v22, 0.0  ;;  %v208_v28 = vadd.f32 %v206_v17, %v202_v16  ;;  %v209_v31 = vadd.f32 %v207_v20, %v203_v19  ;;  %s832_s24 = smov [#allocation2 + $0x10]   ;;  %v613_v44 = vpop.eup %612 }
  0x76   : > { %v232_v29 = vsub.f32 2.0, %v230_v24  ;;  %v343_v30 = vsel %vm341_vm7, 0.001, %v339_v22  ;;  %v233_v32 = vsub.f32 2.0, %v231_v25  ;;  %s253_s26 = sshll.u32 %s832_s24, 4  ;;  %v259_v34 = vmul.f32 %v258_v26, %v975_v0  ;;  %s254_s26 = int_to_ptr.vmem [resolvable:$true] %s253_s26 }
  0x77   : > { %616 = vrcp.f32 %v343_v30  ;;  %v263_v35 = vmul.f32 %v978_v1, %v262_v27  ;;  %v260_v38 = vmul.f32 %v258_v26, %v981_v2  ;;  %v264_v39 = vmul.f32 %v984_v3, %v262_v27  ;;  %s688_s28 = scalar_lea.vmem %s254_s26, 256  ;;  %p693_p6 = scmp.lt.s32.totalorder %s254_s26, %s1070_s17 }
  0x78   : > { %v234_v33 = vmul.f32 %v607_v18, %v232_v29  ;;  %v235_v37 = vmul.f32 %v609_v23, %v233_v32  ;;  %v293_v41 = vmul.f32 %v611_v36, %v1058_v5  ;;  %v321_v42 = vstv %s1076_s4  ;;  %p689_p9 = scmp.ne.s32.totalorder %s254_s26, %s688_s28  ;;  %p694_p3 = scmp.lt.s32.totalorder %s1087_s9, %s688_s28 }
  0x79   : > { %v325_v43 = vstv %s1078_s19  ;;  %v265_v0 = vadd.f32 %v263_v35, %v259_v34  ;;  %v294_v47 = vmul.f32 %v613_v44, %v1064_v11  ;;  %v322_v2 = vmul.f32 %v1041_v55, %v321_v42 }
  0x7a   : > { %v236_v40 = vmul.f32 %v234_v33, %v208_v28  ;;  %v237_v45 = vmul.f32 %v235_v37, %v209_v31  ;;  %v295_v46 = vsub.f32 2.0, %v293_v41  ;;  %v326_v48 = vmul.f32 %v978_v1, %v325_v43  ;;  %p695_p7 = por %p694_p3, %p693_p6 }
  0x7c   : > { %239 = vst [vmem:[#allocation2 + $0x10] sm:$0xff] %v236_v40  ;;  %240 = vst [vmem:[#allocation2 + $0x18] sm:$0xff] %v237_v45  ;;  %p696_p11 = pnand %p695_p7, %p689_p9 }
  0x7e   : > { %v615_v49 = vpop.eup %614 }
  0x7f   : > { %699 = shalt.err (!%p696_p11)  }
  0x80   : > { %s1130_s29 = scalar_lea.hbm %s1056_s6, 1792  ;;  %p703_p2 = scmp.lt.u32.totalorder %s1093_s18, %s1193_s2 }
  0x81   : > { %p701_p1 = scmp.ne.s32.totalorder %s1093_s18, %s1130_s29  ;;  %p704_p5 = scmp.lt.u32.totalorder %s1100_s22, %s1130_s29 }
  0x82   : > { %p706_p8 = scmp.lt.u32.totalorder %s1130_s29, %s1093_s18 }
  0x83   : > { %p705_p4 = por %p704_p5, %p703_p2 }
  0x85   : > { %p707_p10 = por %p706_p8, %p705_p4 }
  0x87   : > { %p708_p12 = pnand %p707_p10, %p701_p1 }
  0x89   : > { %711 = shalt.err (!%p708_p12)  }
  0x8a   : > { %256 = dma.vmem_to_hbm [thread:$0]  %s254_s26, 256, %s1093_s18, [#allocation3 + $0x1]  ;;  %v297_v1 = vmul.f32 %v611_v36, %v295_v46  ;;  %v266_v50 = vadd.f32 %v264_v39, %v260_v38  ;;  %v296_v51 = vsub.f32 2.0, %v294_v47  ;;  %v346_v52 = vmul.f32 %v615_v49, %v1082_v21  ;;  %v617_v57 = vpop.eup %616 }
  0x8b   : > { %s833_s3 = smov [#allocation2 + $0x20]   ;;  %v323_v55 = vmul.f32 %v1047_v60, %v321_v42  ;;  %v327_v56 = vmul.f32 %v984_v3, %v325_v43  ;;  %v328_v58 = vadd.f32 %v326_v48, %v322_v2  ;;  %v347_v62 = vmul.f32 %v617_v57, %v343_v30  ;;  %s834_s25 = smov [#allocation2 + $0x30]  }
  0x8c   : > { %s316_s5 = sshll.u32 %s833_s3, 4  ;;  %v299_v53 = vmul.f32 %v297_v1, %v265_v0  ;;  %v298_v54 = vmul.f32 %v613_v44, %v296_v51  ;;  %v348_v59 = vsub.f32 2.0, %v346_v52  ;;  %s369_s15 = sshll.u32 %s834_s25, 4  ;;  %s317_s5 = int_to_ptr.vmem [resolvable:$true] %s316_s5  ;;  %s370_s15 = int_to_ptr.vmem [resolvable:$true] %s369_s15 }
  0x8d   : > { %v329_v4 = vadd.f32 %v327_v56, %v323_v55  ;;  %v349_v5 = vsub.f32 2.0, %v347_v62  ;;  %s713_s4 = scalar_lea.vmem %s317_s5, 256  ;;  %p718_p0 = scmp.lt.s32.totalorder %s317_s5, %s1070_s17 }
  0x8e   : > { %302 = vst [vmem:[#allocation2 + $0x20] sm:$0xff] %v299_v53  ;;  %v300_v61 = vmul.f32 %v298_v54, %v266_v50  ;;  %v350_v63 = vmul.f32 %v615_v49, %v348_v59  ;;  %p714_p13 = scmp.ne.s32.totalorder %s317_s5, %s713_s4  ;;  %p719_p9 = scmp.lt.s32.totalorder %s1087_s9, %s713_s4 }
  0x90   : > { %303 = vst [vmem:[#allocation2 + $0x28] sm:$0xff] %v300_v61  ;;  %p720_p6 = por %p719_p9, %p718_p0 }
  0x92   : > { %p721_p3 = pnand %p720_p6, %p714_p13 }
  0x94   : > { %724 = shalt.err (!%p721_p3)  }
  0x95   : > { %s1149_s19 = scalar_lea.hbm %s1056_s6, 2048  ;;  %p728_p11 = scmp.lt.u32.totalorder %s1130_s29, %s1193_s2 }
  0x96   : > { %p726_p7 = scmp.ne.s32.totalorder %s1130_s29, %s1149_s19  ;;  %p729_p1 = scmp.lt.u32.totalorder %s1100_s22, %s1149_s19 }
  0x97   : > { %p731_p5 = scmp.lt.u32.totalorder %s1149_s19, %s1130_s29 }
  0x98   : > { %p730_p2 = por %p729_p1, %p728_p11 }
  0x9a   : > { %p732_p4 = por %p731_p5, %p730_p2 }
  0x9c   : > { %p733_p8 = pnand %p732_p4, %p726_p7 }
  0x9e   : > { %736 = shalt.err (!%p733_p8)  }
  0x9f   : > { %319 = dma.vmem_to_hbm [thread:$0]  %s317_s5, 256, %s1130_s29, [#allocation3 + $0x2]  ;;  %v352_v3 = vmul.f32 %v350_v63, %v328_v58  ;;  %v351_v60 = vmul.f32 %v617_v57, %v349_v5 }
  0xa0   : > { %s738_s20 = scalar_lea.vmem %s370_s15, 256  ;;  %p743_p12 = scmp.lt.s32.totalorder %s370_s15, %s1070_s17 }
  0xa1   : > { %355 = vst [vmem:[#allocation2 + $0x30] sm:$0xff] %v352_v3  ;;  %v353_v6 = vmul.f32 %v351_v60, %v329_v4  ;;  %p739_p10 = scmp.ne.s32.totalorder %s370_s15, %s738_s20  ;;  %p744_p13 = scmp.lt.s32.totalorder %s1087_s9, %s738_s20 }
  0xa3   : > { %356 = vst [vmem:[#allocation2 + $0x38] sm:$0xff] %v353_v6  ;;  %p745_p0 = por %p744_p13, %p743_p12 }
  0xa5   : > { %p746_p9 = pnand %p745_p0, %p739_p10 }
  0xa7   : > { %749 = shalt.err (!%p746_p9)  }
  0xa8   : > { %s762_s21 = scalar_lea.hbm %s1056_s6, 2304  ;;  %p753_p3 = scmp.lt.u32.totalorder %s1149_s19, %s1193_s2 }
  0xa9   : > { %p751_p6 = scmp.ne.s32.totalorder %s1149_s19, %s762_s21  ;;  %p754_p7 = scmp.lt.u32.totalorder %s1100_s22, %s762_s21 }
  0xaa   : > { %p756_p1 = scmp.lt.u32.totalorder %s762_s21, %s1149_s19 }
  0xab   : > { %p755_p11 = por %p754_p7, %p753_p3 }
  0xad   : > { %p757_p2 = por %p756_p1, %p755_p11 }
  0xaf   : > { %p758_p5 = pnand %p757_p2, %p751_p6 }
  0xb1   : > { %761 = shalt.err (!%p758_p5)  }
  0xb2   : > { %372 = dma.vmem_to_hbm [thread:$0]  %s370_s15, 256, %s1149_s19, [#allocation3 + $0x3] }
  0xb3   : > { %795 = dma.done.wait [#allocation3], 256 }
  0xb4   : > { %796 = vsyncadd [#allocation3], 4294967040 }
  0xb5   : > { %797 = dma.done.wait [#allocation3 + $0x1], 256 }
  0xb6   : > { %798 = vsyncadd [#allocation3 + $0x1], 4294967040 }
  0xb7   : > { %799 = dma.done.wait [#allocation3 + $0x2], 256 }
  0xb8   : > { %800 = vsyncadd [#allocation3 + $0x2], 4294967040 }
  0xb9   : > { %801 = dma.done.wait [#allocation3 + $0x3], 256 }
  0xba   : > { %802 = vsyncadd [#allocation3 + $0x3], 4294967040 }
  0xbb PF: > { %s16_s14 = sadd.s32 1, %s825_s14   ;;  %s1201_s9 = smov %s809_s10 }
  0xbc   : > { %p13_p4 = scmp.ge.s32.totalorder %s16_s14, 3   ;;  %s1202_s10 = smov %s813_s11 }
  0xbd   : > { %s1203_s11 = smov %s931_s8  ;;  %s1204_s12 = smov %s821_s13 }
  0xbe   : > { %s1205_s13 = smov %s1207_s27  ;;  %15 = sbr.rel (!%p13_p4) target bundleno = 5 (0x5), region = 89 }
  0xc5   :  { %382 = vsyncpa [#allocation5], 1 }
  0xc6   :  { %384 = vsyncpa [#allocation5 + $0x1], 1 }
  0xc7   :  { %385 = vsyncpa [#allocation6], 1 }
  0xc8   :  { %387 = vsyncpa [#allocation6 + $0x1], 1 }
  0xc9   :  { %388 = vsyncmov [#allocation3] }
  0xcc   :  { %s389_s6 = vpop.sfrf %388 }
  0xcd   :  { %p524_p8 = scmp.ne.s32.totalorder %s389_s6, 0 }
  0xcf   :  { %393 = shalt.err (%p524_p8)  }
  0xd0   :  { %395 = vsyncmov [#allocation3 + $0x1] }
  0xd3   :  { %s396_s17 = vpop.sfrf %395 }
  0xd4   :  { %p525_p10 = scmp.ne.s32.totalorder %s396_s17, 0 }
  0xd6   :  { %400 = shalt.err (%p525_p10)  }
  0xd7   :  { %402 = vsyncmov [#allocation3 + $0x2] }
  0xda   :  { %s403_s8 = vpop.sfrf %402 }
  0xdb   :  { %p526_p12 = scmp.ne.s32.totalorder %s403_s8, 0 }
  0xdd   :  { %407 = shalt.err (%p526_p12)  }
  0xde   :  { %409 = vsyncmov [#allocation3 + $0x3] }
  0xe1   :  { %s410_s27 = vpop.sfrf %409 }
  0xe2   :  { %p527_p13 = scmp.ne.s32.totalorder %s410_s27, 0 }
  0xe4   :  { %414 = shalt.err (%p527_p13)  }

</bundles_post_ra>
